<compile_context>
chip_gen: v7x
topology: tpu7x:2x2x1
jax: 0.10.0
libtpu: 0.0.40
codegen_flags: <defaults>
</compile_context>

<pallas_src>
import functools

import jax
import jax.numpy as jnp
from jax import lax
from jax.experimental import pallas as pl
from jax.experimental.pallas import tpu as pltpu


def _poly_loss_kernel(preds_ref, labels_ref, out_ref, *, epsilon):
    # preds_ref: (TN, Cp) logits in native dtype; labels_ref: (TN, 1) int32; out_ref: (TN, 1) f32
    logits = preds_ref[...].astype(jnp.float32)      # upcast in VMEM, not in HBM
    labels = labels_ref[...]                          # (TN, 1) int32
    tn, c = logits.shape

    # numerically stable log-sum-exp over the class (lane) axis
    m = jnp.max(logits, axis=1, keepdims=True)                                   # (TN, 1)
    shifted = logits - m                                                         # (TN, Cp)
    log_sum_exp = jnp.log(jnp.sum(jnp.exp(shifted), axis=1, keepdims=True))      # (TN, 1)

    # exact gather of the target logit via compare + masked sum (one-hot on the lane axis)
    class_ids = lax.broadcasted_iota(jnp.int32, (tn, c), 1)
    target = jnp.sum(jnp.where(class_ids == labels, shifted, 0.0),
                     axis=1, keepdims=True)                                      # (TN, 1)

    logp_correct = target - log_sum_exp          # log softmax at the target class
    ce = -logp_correct                           # cross entropy, reduction='none'
    # p_correct = softmax(preds)[i, labels[i]] == exp(logp_correct)
    p_correct = jnp.exp(logp_correct)

    out_ref[...] = ce + epsilon * (1.0 - p_correct)


def _round_up(x, m):
    return (x + m - 1) // m * m


def poly_loss(preds, labels, epsilon=1.0, *, row_tile=None, vmem_limit_bytes=None):
    """PolyLoss: CE(reduction='none') + epsilon * (1 - softmax(preds)[i, labels[i]]).

    preds: (N, C) float (any float dtype; passed through at native width),
    labels: (N,) int. Returns (N,) float32 per-sample loss.
    """
    n, c = preds.shape
    itemsize = jnp.dtype(preds.dtype).itemsize

    # --- pad classes to a multiple of 128 so every vreg lane is useful ---
    c_pad = max(128, _round_up(c, 128))
    if c_pad != c:
        # large negative => contributes ~0 to softmax and is never the target class
        preds = jnp.pad(preds, ((0, 0), (0, c_pad - c)), constant_values=-1e30)

    # --- choose the row tile: as large as fits a conservative VMEM budget ---
    # Budget ~4 MiB for the f32 working copy of one (row_tile, c_pad) tile, so the
    # double-buffered native-dtype input plus the fused f32 temporaries stay well under
    # the default scoped VMEM and v7x's 64 MiB physical VMEM.
    row_align = max(8, 32 // itemsize)           # 8 rows for f32, 16 for bf16
    if row_tile is None:
        budget_f32 = 4 * 1024 * 1024
        row_tile = budget_f32 // (c_pad * 4)
        row_tile = max(row_align, min(2048, row_tile))
        row_tile = min(row_tile, _round_up(n, row_align))   # don't over-pad tiny inputs
        row_tile = _round_up(row_tile, row_align)
    assert row_tile % row_align == 0

    # --- pad rows to a multiple of the tile (padded rows are sliced off at the end) ---
    n_pad = _round_up(n, row_tile)
    labels = labels.astype(jnp.int32)
    if n_pad != n:
        preds = jnp.pad(preds, ((0, n_pad - n), (0, 0)))
        labels = jnp.pad(labels, (0, n_pad - n))
    labels2d = labels.reshape(n_pad, 1)
    num_tiles = n_pad // row_tile

    if vmem_limit_bytes is None:
        # double-buffered native-dtype input tiles + a few f32 temporaries + headroom,
        # capped so it fits every generation's physical VMEM (v7x: 64 MiB).
        est = 2 * row_tile * c_pad * itemsize + 4 * row_tile * c_pad * 4 + (2 << 20)
        vmem_limit_bytes = int(min(max(est, 32 << 20), 48 << 20))

    kernel = functools.partial(_poly_loss_kernel, epsilon=float(epsilon))

    out = pl.pallas_call(
        kernel,
        out_shape=jax.ShapeDtypeStruct((n_pad, 1), jnp.float32),
        grid_spec=pltpu.PrefetchScalarGridSpec(
            num_scalar_prefetch=0,
            grid=(num_tiles,),
            in_specs=[
                pl.BlockSpec((row_tile, c_pad), lambda i: (i, 0)),
                pl.BlockSpec((row_tile, 1), lambda i: (i, 0)),
            ],
            out_specs=pl.BlockSpec((row_tile, 1), lambda i: (i, 0)),
        ),
        compiler_params=pltpu.CompilerParams(
            dimension_semantics=("parallel",),   # row axis shards across v7x's 2 TensorCores
            vmem_limit_bytes=vmem_limit_bytes,
        ),
    )(preds, labels2d)
    return out.reshape(n_pad)[:n]


def poly_loss_ref(preds, labels, epsilon=1.0):
    # pure-JAX reference for sanity check
    logp = jax.nn.log_softmax(preds.astype(jnp.float32), axis=1)
    ce = -jnp.take_along_axis(logp, labels[:, None], axis=1)[:, 0]
    p = jnp.take_along_axis(jax.nn.softmax(preds.astype(jnp.float32), axis=1),
                            labels[:, None], axis=1)[:, 0]
    return ce + epsilon * (1.0 - p)


if __name__ == "__main__":
    key = jax.random.PRNGKey(0)
    k1, k2, k3, k4 = jax.random.split(key, 4)

    # Test 1: small f32 case (batch=8 samples, 32 classes) — exercises class padding 32 -> 128.
    N, C = 8, 32
    preds = jax.random.normal(k1, (N, C), dtype=jnp.float32)
    labels = jax.random.randint(k2, (N,), 0, C, dtype=jnp.int32)
    out = poly_loss(preds, labels, epsilon=1.0)
    jax.block_until_ready(out)
    ref = poly_loss_ref(preds, labels, epsilon=1.0)
    assert out.shape == (N,)
    assert jnp.allclose(out, ref, atol=1e-5, rtol=1e-5), (out, ref)

    # Test 2: bf16 logits with non-multiple shapes — exercises native-dtype pass-through,
    # class padding 200 -> 256, and row-tail padding (100 rows -> next multiple of 16).
    N2, C2 = 100, 200
    preds2 = jax.random.normal(k3, (N2, C2), dtype=jnp.bfloat16)
    labels2 = jax.random.randint(k4, (N2,), 0, C2, dtype=jnp.int32)
    out2 = poly_loss(preds2, labels2, epsilon=2.0)
    jax.block_until_ready(out2)
    ref2 = poly_loss_ref(preds2, labels2, epsilon=2.0)
    assert out2.shape == (N2,)
    assert jnp.allclose(out2, ref2, atol=1e-4, rtol=1e-4), (out2, ref2)

    print("KERNEL_OK")
</pallas_src>

<mosaic_0001>
module attributes {stable_mosaic.version = 11 : i64} {
  func.func @_poly_loss_kernel(%arg0: i32, %arg1: memref<8x128xf32, #tpu.memory_space<vmem>>, %arg2: memref<8x1xi32, #tpu.memory_space<vmem>>, %arg3: memref<8x1xf32, #tpu.memory_space<vmem>>) attributes {dimension_semantics = [#tpu.dimension_semantics<parallel>], iteration_bounds = array<i64: 1>, scalar_prefetch = 0 : i64, scratch_operands = 0 : i64, tpu.core_type = #tpu.core_type<tc>, window_params = [{transform_indices = @transform_0, window_bounds = array<i64: 8, 128>}, {transform_indices = @transform_1, window_bounds = array<i64: 8, 1>}, {transform_indices = @transform_2, window_bounds = array<i64: 8, 1>}]} {
    %c0 = arith.constant 0 : index
    %c0_0 = arith.constant 0 : index
    %0 = vector.load %arg1[%c0, %c0_0] : memref<8x128xf32, #tpu.memory_space<vmem>>, vector<8x128xf32>
    %c0_1 = arith.constant 0 : index
    %c0_2 = arith.constant 0 : index
    %1 = vector.load %arg2[%c0_1, %c0_2] : memref<8x1xi32, #tpu.memory_space<vmem>>, vector<8x1xi32>
    %cst = arith.constant dense<0xFF800000> : vector<8xf32>
    %2 = vector.multi_reduction <maximumf>, %0, %cst [1] : vector<8x128xf32> to vector<8xf32>
    %3 = vector.shape_cast %2 : vector<8xf32> to vector<8x1xf32>
    %4 = vector.broadcast %3 : vector<8x1xf32> to vector<8x128xf32>
    %5 = arith.subf %0, %4 : vector<8x128xf32>
    %6 = math.exp %5 : vector<8x128xf32>
    %cst_3 = arith.constant dense<0.000000e+00> : vector<8xf32>
    %7 = vector.multi_reduction <add>, %6, %cst_3 [1] : vector<8x128xf32> to vector<8xf32>
    %8 = vector.shape_cast %7 : vector<8xf32> to vector<8x1xf32>
    %9 = math.log %8 : vector<8x1xf32>
    %10 = tpu.iota {dimensions = array<i32: 1>} : vector<8x128xi32>
    %11 = vector.broadcast %1 : vector<8x1xi32> to vector<8x128xi32>
    %12 = arith.cmpi eq, %10, %11 : vector<8x128xi32>
    %cst_4 = arith.constant 0.000000e+00 : f32
    %13 = vector.broadcast %cst_4 : f32 to vector<8x128xf32>
    %14 = arith.select %12, %5, %13 : vector<8x128xi1>, vector<8x128xf32>
    %cst_5 = arith.constant dense<0.000000e+00> : vector<8xf32>
    %15 = vector.multi_reduction <add>, %14, %cst_5 [1] : vector<8x128xf32> to vector<8xf32>
    %16 = vector.shape_cast %15 : vector<8xf32> to vector<8x1xf32>
    %17 = arith.subf %16, %9 : vector<8x1xf32>
    %cst_6 = arith.constant 0.000000e+00 : f32
    %18 = vector.broadcast %cst_6 : f32 to vector<8x1xf32>
    %19 = arith.subf %18, %17 : vector<8x1xf32>
    %20 = math.exp %17 : vector<8x1xf32>
    %cst_7 = arith.constant 1.000000e+00 : f32
    %21 = vector.broadcast %cst_7 : f32 to vector<8x1xf32>
    %22 = arith.subf %21, %20 : vector<8x1xf32>
    %cst_8 = arith.constant 1.000000e+00 : f32
    %23 = vector.broadcast %cst_8 : f32 to vector<8x1xf32>
    %24 = arith.mulf %23, %22 : vector<8x1xf32>
    %25 = arith.addf %19, %24 : vector<8x1xf32>
    %c0_9 = arith.constant 0 : index
    %c0_10 = arith.constant 0 : index
    %26 = vector.load %arg3[%c0_9, %c0_10] : memref<8x1xf32, #tpu.memory_space<vmem>>, vector<8x1xf32>
    tpu.vector_store %arg3[%c0_9, %c0_10], %25 {strides = array<i32>} : memref<8x1xf32, #tpu.memory_space<vmem>>, vector<8x1xf32>,
    return
  }
  func.func @transform_0(%arg0: i32) -> (i32, i32) {
    %c0_i32 = arith.constant 0 : i32
    %c0_i32_0 = arith.constant 0 : i32
    return %arg0, %c0_i32 : i32, i32
  }
  func.func @transform_1(%arg0: i32) -> (i32, i32) {
    %c0_i32 = arith.constant 0 : i32
    %c0_i32_0 = arith.constant 0 : i32
    return %arg0, %c0_i32 : i32, i32
  }
  func.func @transform_2(%arg0: i32) -> (i32, i32) {
    %c0_i32 = arith.constant 0 : i32
    %c0_i32_0 = arith.constant 0 : i32
    return %arg0, %c0_i32 : i32, i32
  }
}

</mosaic_0001>

<bundles_post_ra>
// kernel: tpu_custom_call.1
= control target key start
LH: loop header
LB: loop body
LE: loop exit
PB: predicated region body
PF: predicated region fallthrough
CT: control target
= control target key end

     0   :  { %v51_v1 = vmov 0   ;;  %v22_v6 = vlaneseq  ;;  %vm37_vm1 = vcmask 7168   ;;  %s76_s0 = inlined_call_operand.vmem [shape: f32[8,128], index: 0, kind: input, shape index: {}]   ;;  %s77_s1 = inlined_call_operand.vmem [shape: s32[8,1], index: 1, kind: input, shape index: {}]   ;;  %s78_s2 = inlined_call_operand.vmem [shape: f32[8,1], index: 2, kind: output, shape index: {}]  }
   0x1   :  { %v11_v0 = vld [vmem:[%s76_s0] sm:$0xff]  ;;  %44 = vset.pattern.permute.xlu0 %v51_v1 }
   0x2   :  { %13 = vmax.xlane.f32.xlu0 %v11_v0  ;;  %v12_v2 = vld [vmem:[%s77_s1] sm:$0xff]  ;;  %v23_v7 = vand.u32 127, %v22_v6 }
  0x18   :  { %25 = vperm.xlu0 %44, %v12_v2  }
  0x8f   :  { %v14_v3 = vpop.xlane.xlu0 %13 }
  0x90   :  { %v15_v4 = vsub.f32 %v11_v0, %v14_v3 }
  0x92   :  { %v16_v5 = vmul.f32 1.442695, %v15_v4 }
  0x94   :  { %45 = vpow2.f32 %v16_v5 }
  0x97   :  { %v26_v8 = vpop.permute.xlu0 %25 }
  0x98   :  { %vm27_vm0 = vcmp.eq.s32.totalorder %v23_v7, %v26_v8 }
  0x99   :  { %v28_v10 = vsel %vm27_vm0, %v15_v4, 0.0 }
  0x9e   :  { %v46_v9 = vpop.eup %45 }
  0x9f   :  { %18 = vadd.xlane.f32.xlu1 %v46_v9 }
  0xa3   :  { %29 = vadd.xlane.f32.xlu1 %v28_v10 }
 0x12c   :  { %v19_v11 = vpop.xlane.xlu1 %18 }
 0x12d   :  { %47 = vlog2.f32 %v19_v11 }
 0x130   :  { %v30_v14 = vpop.xlane.xlu1 %29 }
 0x137   :  { %v48_v12 = vpop.eup %47 }
 0x138   :  { %v21_v13 = vmul.f32 0.6931472, %v48_v12 }
 0x13a   :  { %v31_v15 = vsub.f32 %v30_v14, %v21_v13 }
 0x13c   :  { %v33_v16 = vmul.f32 1.442695, %v31_v15  ;;  %v32_v18 = vsub.f32 0.0, %v31_v15 }
 0x13e   :  { %49 = vpow2.f32 %v33_v16 }
 0x148   :  { %v50_v17 = vpop.eup %49 }
 0x149   :  { %v35_v19 = vsub.f32 1.0, %v50_v17 }
 0x14b   :  { %v36_v20 = vadd.f32 %v35_v19, %v32_v18 }
 0x14d   :  { %38 = vst.msk [vmem:[%s78_s2] sm:$0xff] %vm37_vm1, %v36_v20 }

</bundles_post_ra>
